<compile_context>
chip_gen: v5e
topology: v5e:2x2
jax: 0.10.0
libtpu: 0.0.40
codegen_flags: <defaults>
</compile_context>

<pallas_src>
import functools

import jax
import jax.numpy as jnp
from jax.experimental import pallas as pl
from jax.experimental.pallas import tpu as pltpu


# ----------------------------------------------------------------------------
# Kernel: assemble CT class prompts for one batch element with a single dense
# full-slab store.
#   tmpl_ref : (CT, L, D)   per-class [prefix | zeros | suffix] template
#   ctxp_ref : (1,  L, D)   batch-b context, pre-padded to L rows at offset Lp
#   out_ref  : (1, CT, L, D)
# ----------------------------------------------------------------------------
def _prompt_assemble_kernel(tmpl_ref, ctxp_ref, out_ref, *, lp, lc):
    ct, seq_len, d = tmpl_ref.shape
    row = jax.lax.broadcasted_iota(jnp.int32, (ct, seq_len, d), 1)
    is_ctx = (row >= lp) & (row < lp + lc)
    ctx_b = jnp.broadcast_to(ctxp_ref[...], (ct, seq_len, d))
    # One unmasked full-tile store (no masked sub-row writes / RMW traffic).
    out_ref[0] = jnp.where(is_ctx, ctx_b, tmpl_ref[...])


def _choose_class_tile(n_cls, bytes_per_class, target_bytes=2 * 1024 * 1024):
    """Largest class-tile CT whose (L, D) slab stays under ~2 MiB."""
    ct = max(1, min(n_cls, target_bytes // max(1, bytes_per_class)))
    return int(ct)


def prompt_learner_forward(ctx, token_prefix, token_suffix, tokenized_prompts,
                           infer=False):
    """Pallas implementation of PromptLearner.forward (prompt_pos == 2)."""
    batch, lc, ctx_dim = ctx.shape
    n_cls, lp, _ = token_prefix.shape
    _, ls, _ = token_suffix.shape
    seq_len = lp + lc + ls
    dtype = ctx.dtype
    tok_len = tokenized_prompts.shape[-1]
    tokenized_prompts = tokenized_prompts.reshape(n_cls, tok_len)

    # One-time, tiny prep (layout plumbing; n_cls*L*D and batch*L*D elements):
    #  - static per-class template with a zeroed ctx slot,
    #  - ctx padded to L rows so the kernel can select rows with no concat.
    template = jnp.concatenate(
        [token_prefix.astype(dtype),
         jnp.zeros((n_cls, lc, ctx_dim), dtype),
         token_suffix.astype(dtype)],
        axis=1)                                            # (n_cls, L, D)
    ctx_pad = jnp.pad(ctx, ((0, 0), (lp, ls), (0, 0)))     # (batch, L, D)

    itemsize = jnp.dtype(dtype).itemsize
    bytes_per_class = seq_len * ctx_dim * itemsize
    ct = _choose_class_tile(n_cls, bytes_per_class)
    n_chunks = pl.cdiv(n_cls, ct)

    # VMEM budget: double-buffered out + template + ctx blocks, with margin,
    # kept well under v7x's tighter (64 MiB physical / 32 MiB scoped) budget.
    out_block_b = ct * bytes_per_class
    needed = 2 * (out_block_b + ct * bytes_per_class + bytes_per_class)
    vmem_limit = int(min(32 * 1024 * 1024, max(16 * 1024 * 1024, 2 * needed)))

    kernel = functools.partial(_prompt_assemble_kernel, lp=lp, lc=lc)
    prompts4 = pl.pallas_call(
        kernel,
        out_shape=jax.ShapeDtypeStruct((batch, n_cls, seq_len, ctx_dim), dtype),
        # Class chunks OUTER, batch INNER -> template block index is constant
        # across the inner loop, so Pallas skips re-fetching prefix/suffix.
        grid=(n_chunks, batch),
        in_specs=[
            pl.BlockSpec((ct, seq_len, ctx_dim), lambda c, b: (c, 0, 0)),
            pl.BlockSpec((1, seq_len, ctx_dim), lambda c, b: (b, 0, 0)),
        ],
        out_specs=pl.BlockSpec((1, ct, seq_len, ctx_dim),
                               lambda c, b: (b, c, 0, 0)),
        compiler_params=pltpu.CompilerParams(
            dimension_semantics=("parallel", "parallel"),
            vmem_limit_bytes=vmem_limit),
    )(template, ctx_pad)
    prompts = prompts4.reshape(batch * n_cls, seq_len, ctx_dim)

    # Token tiling: lane-sparse (tok_len << 128), so a Pallas copy would be all
    # masked stores; leave it to XLA where the broadcast fuses into consumers.
    tok_out = jnp.broadcast_to(
        tokenized_prompts[None], (batch, n_cls, tok_len)
    ).reshape(batch * n_cls, tok_len)

    if infer:
        return prompts, tok_out
    return prompts, tok_out, None, None


def _reference_forward(ctx, token_prefix, token_suffix, tokenized_prompts):
    """Plain-JAX mirror of the PyTorch forward, for verification."""
    batch, lc, ctx_dim = ctx.shape
    n_cls = token_prefix.shape[0]
    prefix = jnp.broadcast_to(token_prefix[None], (batch,) + token_prefix.shape)
    suffix = jnp.broadcast_to(token_suffix[None], (batch,) + token_suffix.shape)
    ctx_r = jnp.broadcast_to(ctx[:, None], (batch, n_cls, lc, ctx_dim))
    prompts = jnp.concatenate([prefix, ctx_r, suffix], axis=2)
    prompts = prompts.reshape(batch * n_cls, -1, ctx_dim)
    tok = jnp.broadcast_to(tokenized_prompts[None],
                           (batch,) + tokenized_prompts.shape)
    tok = tok.reshape(batch * n_cls, -1)
    return prompts, tok


if __name__ == "__main__":
    # Small deterministic configuration consistent with the module:
    #   prefix length 1 (SOS), n_ctx*topK = 4 context tokens, suffix length 3,
    #   ctx_dim = 128 (lane-aligned), n_cls = 3, batch = 2.
    batch, n_cls = 2, 3
    lp, lc, ls = 1, 4, 3
    ctx_dim = 128
    tok_len = 8

    key = jax.random.PRNGKey(0)
    k_ctx, k_pre, k_suf, k_tok = jax.random.split(key, 4)

    ctx = jax.random.normal(k_ctx, (batch, lc, ctx_dim), dtype=jnp.float32)
    token_prefix = jax.random.normal(k_pre, (n_cls, lp, ctx_dim),
                                     dtype=jnp.float32)
    token_suffix = jax.random.normal(k_suf, (n_cls, ls, ctx_dim),
                                     dtype=jnp.float32)
    tokenized_prompts = jax.random.randint(k_tok, (n_cls, tok_len), 0, 49408,
                                           dtype=jnp.int32)

    prompts, tok_out, _, _ = prompt_learner_forward(
        ctx, token_prefix, token_suffix, tokenized_prompts, infer=False)
    jax.block_until_ready(prompts)
    jax.block_until_ready(tok_out)

    ref_prompts, ref_tok = _reference_forward(ctx, token_prefix, token_suffix,
                                              tokenized_prompts)
    assert prompts.shape == (batch * n_cls, lp + lc + ls, ctx_dim)
    assert tok_out.shape == (batch * n_cls, tok_len)
    assert jnp.allclose(prompts, ref_prompts)
    assert jnp.array_equal(tok_out, ref_tok)

    # TODO(synk): `only_prefix` and the CLIP token_embedding lookup are outside
    # this forward hot path and are not implemented here.
    print("KERNEL_OK")
</pallas_src>

<mosaic_0001>
module attributes {stable_mosaic.version = 11 : i64} {
  func.func @_prompt_assemble_kernel(%arg0: i32, %arg1: i32, %arg2: memref<3x8x128xf32, #tpu.memory_space<vmem>>, %arg3: memref<1x8x128xf32, #tpu.memory_space<vmem>>, %arg4: memref<1x3x8x128xf32, #tpu.memory_space<vmem>>) attributes {dimension_semantics = [#tpu.dimension_semantics<parallel>, #tpu.dimension_semantics<parallel>], iteration_bounds = array<i64: 1, 2>, scalar_prefetch = 0 : i64, scratch_operands = 0 : i64, tpu.core_type = #tpu.core_type<tc>, window_params = [{transform_indices = @transform_0, window_bounds = array<i64: 3, 8, 128>}, {transform_indices = @transform_1, window_bounds = array<i64: 1, 8, 128>}, {transform_indices = @transform_2, window_bounds = array<i64: 1, 3, 8, 128>}]} {
    %0 = tpu.iota {dimensions = array<i32: 1>} : vector<3x8x128xi32>
    %c1_i32 = arith.constant 1 : i32
    %1 = vector.broadcast %c1_i32 : i32 to vector<3x8x128xi32>
    %2 = arith.cmpi sge, %0, %1 : vector<3x8x128xi32>
    %c5_i32 = arith.constant 5 : i32
    %3 = vector.broadcast %c5_i32 : i32 to vector<3x8x128xi32>
    %4 = arith.cmpi slt, %0, %3 : vector<3x8x128xi32>
    %5 = arith.andi %2, %4 : vector<3x8x128xi1>
    %c0 = arith.constant 0 : index
    %c0_0 = arith.constant 0 : index
    %c0_1 = arith.constant 0 : index
    %6 = vector.load %arg3[%c0, %c0_0, %c0_1] : memref<1x8x128xf32, #tpu.memory_space<vmem>>, vector<1x8x128xf32>
    %7 = vector.shape_cast %6 : vector<1x8x128xf32> to vector<1x8x128xf32>
    %8 = vector.broadcast %7 : vector<1x8x128xf32> to vector<3x8x128xf32>
    %c0_2 = arith.constant 0 : index
    %c0_3 = arith.constant 0 : index
    %c0_4 = arith.constant 0 : index
    %9 = vector.load %arg2[%c0_2, %c0_3, %c0_4] : memref<3x8x128xf32, #tpu.memory_space<vmem>>, vector<3x8x128xf32>
    %10 = arith.select %5, %8, %9 : vector<3x8x128xi1>, vector<3x8x128xf32>
    %c0_5 = arith.constant 0 : index
    %c0_6 = arith.constant 0 : index
    %c0_7 = arith.constant 0 : index
    %c0_8 = arith.constant 0 : index
    %11 = vector.load %arg4[%c0_5, %c0_6, %c0_7, %c0_8] : memref<1x3x8x128xf32, #tpu.memory_space<vmem>>, vector<1x3x8x128xf32>
    %12 = vector.shape_cast %11 : vector<1x3x8x128xf32> to vector<3x8x128xf32>
    %13 = vector.shape_cast %10 : vector<3x8x128xf32> to vector<1x3x8x128xf32>
    tpu.vector_store %arg4[%c0_5, %c0_6, %c0_7, %c0_8], %13 {strides = array<i32>} : memref<1x3x8x128xf32, #tpu.memory_space<vmem>>, vector<1x3x8x128xf32>,
    return
  }
  func.func @transform_0(%arg0: i32, %arg1: i32) -> (i32, i32, i32) {
    %c0_i32 = arith.constant 0 : i32
    %c0_i32_0 = arith.constant 0 : i32
    %c0_i32_1 = arith.constant 0 : i32
    return %arg0, %c0_i32, %c0_i32_0 : i32, i32, i32
  }
  func.func @transform_1(%arg0: i32, %arg1: i32) -> (i32, i32, i32) {
    %c0_i32 = arith.constant 0 : i32
    %c0_i32_0 = arith.constant 0 : i32
    %c0_i32_1 = arith.constant 0 : i32
    return %arg1, %c0_i32, %c0_i32_0 : i32, i32, i32
  }
  func.func @transform_2(%arg0: i32, %arg1: i32) -> (i32, i32, i32, i32) {
    %c0_i32 = arith.constant 0 : i32
    %c0_i32_0 = arith.constant 0 : i32
    %c0_i32_1 = arith.constant 0 : i32
    return %arg1, %arg0, %c0_i32, %c0_i32_0 : i32, i32, i32, i32
  }
}

</mosaic_0001>

<bundles_post_ra>
// kernel: tpu_custom_call.1
= control target key start
LH: loop header
LB: loop body
LE: loop exit
PB: predicated region body
PF: predicated region fallthrough
CT: control target
= control target key end

     0   :  { %7 = vsyncpa [#allocation3], 0  ;;  %s737_s0 = inlined_call_operand.hbm [shape: f32[3,8,128], index: 0, kind: input, shape index: {}]   ;;  %s738_s1 = inlined_call_operand.hbm [shape: f32[2,8,128], index: 1, kind: input, shape index: {}]   ;;  %s739_s2 = inlined_call_operand.hbm [shape: f32[2,3,8,128], index: 2, kind: output, shape index: {}]  }
   0x1   :  { %8 = vsyncpa [#allocation6], 0 }
   0x2   :  { %10 = vsyncpa [#allocation6 + $0x1], 0 }
   0x3   :  { %11 = vsyncpa [#allocation4], 0 }
   0x4   :  { %13 = vsyncpa [#allocation4 + $0x1], 0  ;;  %s593_s9 = smov 0   ;;  %s595_s10 = smov 0  }
   0x5   :  { %s597_s11 = smov 0   ;;  %s599_s12 = smov 0  }
   0x6   :  { %s601_s13 = smov 0   ;;  %s603_s14 = smov 0  }
   0x7 LB: > { %s333_s15 = sadd.s32 4294967295, %s571_s14   ;;  %p335_p0 = scmp.ge.s32.totalorder %s571_s14, 1  ;;  %s571_s14 = sphi %s603_s14, %s19_s14   ;;  %s567_s13 = sphi %s601_s13, %s750_s13   ;;  %s563_s12 = sphi %s599_s12, %s749_s12   ;;  %s559_s11 = sphi %s597_s11, %s748_s11   ;;  %s555_s10 = sphi %s595_s10, %s747_s10   ;;  %s551_s9 = sphi %s593_s9, %s746_s9  }
   0x8   : > { %p625_p1 = scmp.eq.s32.totalorder %s333_s15, 0  ;;  %p116_p2 = scmp.lt.s32.totalorder %s571_s14, 3 }
   0x9   : > { %s130_s19 = sshll.u32 %s737_s0, 4  ;;  %s573_s21 = smov [#allocation2]   ;;  %s131_s19 = int_to_ptr.hbm [resolvable:$true] %s130_s19 }
   0xa   : > { %p633_p3 = pnand %p335_p0, %p116_p2  ;;  %s132_s22 = sshll.u32 %s573_s21, 4  ;;  %s133_s22 = int_to_ptr.vmem [resolvable:$true] %s132_s22 }
   0xb   : > { %p337_p6 = scmp.ge.s32.totalorder %s571_s14, 2  ;;  %s574_s23 = smov 128  }
   0xc   : > { %p356_p4 = pneg %p633_p3  ;;  %s575_s24 = smov 8  }
   0xd   : > { %s334_s25 = sadd.s32 4294967294, %s571_s14   ;;  %s28_s26 = sadd.s32 1, %s567_s13 }
   0xe   : > { %p357_p5 = pnand %p356_p4, %p625_p1  ;;  %s64_s27 = sadd.s32 1, %s559_s11 }
   0xf   : > { %p29_p7 = scmp.ge.s32.totalorder %s28_s26, 2  ;;  %p71_p8 = scmp.ne.s32.totalorder %s559_s11, %s555_s10 }
  0x10   : > { %359 = dma.hbm_to_vmem [thread:$0]  (!%p357_p5), %s131_s19, 384, %s133_s22, [#allocation3], %s574_s23, %s574_s23, %s575_s24  }
  0x11   : > { %p72_p9 = scmp.eq.s32.totalorder %s571_s14, 0  ;;  %p77_p10 = scmp.ne.s32.totalorder %s555_s10, %s551_s9 }
  0x12   : > { %s752_s26 = smov (%p29_p7, %s28_s26), 0  ;;  %p103_p13 = scmp.eq.s32.totalorder %s333_s15, 1 }
  0x13   : > { %p652_p11 = por %p72_p9, %p71_p8  ;;  %p658_p12 = por %p625_p1, %p77_p10 }
  0x14   : > { %s61_s30 = ssub.s32 %s567_s13, %s752_s26  ;;  %p109_p2 = scmp.eq.s32.totalorder %s334_s25, 1 }
  0x15   : > { %p62_p0 = scmp.eq.s32.totalorder %s61_s30, 0  ;;  %p664_p4 = por %p103_p13, %p71_p8 }
  0x16   : > { %p369_p5 = scmp.lt.s32.totalorder %s571_s14, 2  ;;  %p672_p7 = por %p109_p2, %p77_p10 }
  0x17   : > { %s670_s4 = scalar_select %p62_p0, %s559_s11, %s64_s27  }
  0x18   : > { %s146_s6 = sand.u32 1, %s559_s11   ;;  %s339_s8 = sshll.u32 %s567_s13, 3 }
  0x19   : > { %s338_s7 = sshll.u32 %s146_s6, 3  ;;  %s154_s15 = scalar_lea.hbm %s738_s1, %s339_s8 }
  0x1a   : > { %s150_s19 = scalar_lea.vmem [#allocation5], %s338_s7  ;;  %s156_s22 = sshll.u32 %s154_s15, 4  ;;  %s157_s22 = int_to_ptr.hbm [resolvable:$true] %s156_s22 }
  0x1b   : > { %s158_s21 = sshll.u32 %s150_s19, 4  ;;  %p361_p8 = pnand %p369_p5, %p652_p11  ;;  %s159_s21 = int_to_ptr.vmem [resolvable:$true] %s158_s21 }
  0x1c   : > { %s147_s23 = scalar_lea.sflag [#allocation6], %s146_s6  ;;  %167 = sbr.rel (%p633_p3) target bundleno = 56 (0x38), region = 28 }
  0x1d   : > { %363 = dma.hbm_to_vmem [thread:$0]  (!%p361_p8), %s157_s22, 128, %s159_s21, %s147_s23  }
  0x21   : > { %538 = dma.done.wait (%p625_p1), [#allocation3], 384  }
  0x22   : > { %540 = vsyncadd (%p625_p1), [#allocation3], 4294966912  ;;  %s690_s24 = sand.u32 1, %s555_s10  }
  0x23   : > { %s342_s25 = sshll.u32 %s690_s24, 3  ;;  %s175_s27 = scalar_lea.sflag [#allocation6], %s690_s24 }
  0x24   : > { %s178_s28 = scalar_lea.vmem [#allocation5], %s342_s25 }
  0x25   : > { %542 = dma.done.wait (%p658_p12), %s175_s27, 128  }
  0x26   : > { %544 = vsyncadd (%p658_p12), %s175_s27, 4294967168  ;;  %s346_s20 = smul.u32 24, %s690_s24  ;;  %v202_v0 = vlaneseq  ;;  %v207_v2 = vld [vmem:[%s178_s28] sm:$0xff]  ;;  %v209_v4 = vld [vmem:[#allocation2 + $0x8] sm:$0xff]  ;;  %s505_s22 = scalar_lea.hbm %s739_s2, 48 }
  0x27   : > { %s347_s16 = smul.u32 24, %s563_s12  ;;  %v208_v3 = vld [vmem:[#allocation2] sm:$0xff]  ;;  %v210_v7 = vld [vmem:[#allocation2 + $0x10] sm:$0xff]  ;;  %s218_s12 = scalar_lea.sflag [#allocation4], %s690_s24 }
  0x28   : > { %v203_v1 = vshrl.u32 %v202_v0, 7  ;;  %s199_s8 = scalar_lea.vmem [#allocation7], %s346_s20 }
  0x29   : > { %s231_s7 = scalar_lea.hbm %s739_s2, %s347_s16  ;;  %s232_s17 = sshll.u32 %s199_s8, 4  ;;  %s233_s17 = int_to_ptr.vmem [resolvable:$true] %s232_s17 }
  0x2a   : > { %vm204_vm0 = vcmp.ge.s32.totalorder %v203_v1, 1  ;;  %vm205_vm1 = vcmp.lt.s32.totalorder %v203_v1, 5  ;;  %s234_s18 = sshll.u32 %s231_s7, 4  ;;  %s235_s18 = int_to_ptr.hbm [resolvable:$true] %s234_s18 }
  0x2b   : > { %vm206_vm2 = vmand %vm204_vm0, %vm205_vm1  ;;  %s499_s29 = sshra.s32 %s235_s18, 4  ;;  %s500_s29 = int_to_ptr.hbm [resolvable:$true] %s499_s29 }
  0x2c   : > { %v211_v5 = vsel %vm206_vm2, %v207_v2, %v208_v3  ;;  %v212_v6 = vsel %vm206_vm2, %v207_v2, %v209_v4  ;;  %v213_v8 = vsel %vm206_vm2, %v207_v2, %v210_v7  ;;  %s501_s15 = scalar_lea.hbm %s500_s29, 24  ;;  %p506_p10 = scmp.lt.s32.totalorder %s500_s29, %s739_s2 }
  0x2d   : > { %214 = vst [vmem:[%s199_s8] sm:$0xff] %v211_v5  ;;  %p502_p1 = scmp.ne.s32.totalorder %s500_s29, %s501_s15  ;;  %p507_p11 = scmp.lt.s32.totalorder %s505_s22, %s501_s15 }
  0x2e   : > { %215 = vst [vmem:[%s199_s8 + $0x8] sm:$0xff] %v212_v6 }
  0x2f   : > { %216 = vst [vmem:[%s199_s8 + $0x10] sm:$0xff] %v213_v8  ;;  %p503_p3 = pnand %p502_p1, %p664_p4  ;;  %p508_p12 = por %p507_p11, %p506_p10 }
  0x31   : > { %p504_p9 = pneg %p503_p3 }
  0x33   : > { %p509_p13 = pnand %p508_p12, %p504_p9 }
  0x35   : > { %512 = shalt.err (!%p509_p13)
}
  0x36   : > { %s576_s24 = smov 128   ;;  %s577_s27 = smov 8  }
  0x37   : > { %354 = dma.vmem_to_hbm [thread:$0]  (%p664_p4), %s233_s17, 384, %s235_s18, %s218_s12, %s576_s24, %s576_s24, %s577_s27  }
  0x38 PF: > { %s249_s28 = sand.u32 1, %s551_s9   ;;  %p365_p0 = pnand %p337_p6, %p672_p7 }
  0x39   : > { %s250_s20 = scalar_lea.sflag [#allocation4], %s249_s28 }
  0x3a   : > { %p366_p2 = pneg %p365_p0 }
  0x3c   : > { %546 = dma.done.wait (%p366_p2), %s250_s20, 384  }
  0x3d   : > { %548 = vsyncadd (%p366_p2), %s250_s20, 4294966912  ;;  %s19_s14 = sadd.s32 1, %s571_s14   ;;  %s746_s9 = smov %s555_s10 }
  0x3e   : > { %p16_p5 = scmp.ge.s32.totalorder %s19_s14, 4   ;;  %s747_s10 = smov %s559_s11 }
  0x3f   : > { %s748_s11 = smov %s670_s4  ;;  %s749_s12 = smov %s567_s13 }
  0x40   : > { %s750_s13 = smov %s752_s26  ;;  %18 = sbr.rel (!%p16_p5) target bundleno = 7 (0x7), region = 79 }
  0x45   :  { %256 = vsyncpa [#allocation3], 1 }
  0x46   :  { %258 = vsyncpa [#allocation3 + $0x1], 1 }
  0x47   :  { %259 = vsyncpa [#allocation6], 1 }
  0x48   :  { %261 = vsyncpa [#allocation6 + $0x1], 1 }
  0x49   :  { %262 = vsyncpa [#allocation4], 1 }
  0x4a   :  { %264 = vsyncpa [#allocation4 + $0x1], 1 }

</bundles_post_ra>
